<compile_context>
chip_gen: v7x
topology: tpu7x:2x2x1
jax: 0.10.0
libtpu: 0.0.40
codegen_flags: <defaults>
</compile_context>

<pallas_src>
import jax
import jax.numpy as jnp
from jax.experimental import pallas as pl
from jax.experimental.pallas import tpu as pltpu

IGNORE_INDEX = -100


def _cdiv(a, b):
    return -(-a // b)


def _round_up(a, b):
    return _cdiv(a, b) * b


def _vmem_budget_bytes():
    """~0.7x physical VMEM (v5e/v6e: ~90 MiB, v7x: ~44.8 MiB)."""
    cap = 64 * 1024 * 1024
    try:
        info = pltpu.get_tpu_info()
        cap = int(getattr(info, "vmem_capacity_bytes", cap))
    except Exception:
        pass
    return int(cap * 0.7)


def _pick_row_tile(n_rows, n_cols, in_itemsize, budget, min_tm, max_tile=1024):
    """Largest row tile fitting the budget, capped for >= ~8 grid steps."""
    # 2 pipeline buffers of the native-dtype input + ~2 live f32 temporaries.
    per_elem = 2 * in_itemsize + 2 * 4
    bytes_per_row = n_cols * per_elem + 64       # + labels / partials slack
    tm = budget // max(bytes_per_row, 1)
    cap = _round_up(max(_cdiv(n_rows, 8), min_tm), min_tm)
    tm = min(tm, max_tile, cap)
    tm = max(min_tm, (tm // min_tm) * min_tm)
    return tm


def _pick_class_chunk(n_cols, in_itemsize, budget, target_tm=256):
    """128-aligned class chunk so a ~target_tm row tile fits the budget."""
    per_elem = 2 * in_itemsize + 2 * 4
    tc = budget // max(target_tm * per_elem, 1)
    tc = max(128, (tc // 128) * 128)
    return min(tc, _round_up(n_cols, 128))


def _ce_kernel(logits_ref, labels_ref, out_ref):
    """One row tile (full class axis): per-tile partial CE sum."""
    x = logits_ref[...].astype(jnp.float32)                 # (tm, C)
    lab = labels_ref[...]                                    # (tm, 1) int32

    m = jnp.max(x, axis=-1, keepdims=True)                   # (tm, 1)
    sumexp = jnp.sum(jnp.exp(x - m), axis=-1, keepdims=True)  # (tm, 1)

    # pick x[label] via a broadcast one-hot compare (no dynamic gather on TPU)
    cols = jax.lax.broadcasted_iota(jnp.int32, (1, x.shape[-1]), 1)
    picked = jnp.sum(jnp.where(cols == lab, x, 0.0), axis=-1, keepdims=True)

    per_row = m + jnp.log(sumexp) - picked                    # -logp[label]
    masked = jnp.where(lab != IGNORE_INDEX, per_row, 0.0)     # ignored rows -> 0

    rows8 = jax.lax.broadcasted_iota(jnp.int32, (8, 1), 0)
    out_ref[...] = jnp.where(rows8 == 0, jnp.sum(masked), 0.0)


def _ce_split_kernel(logits_ref, labels_ref, out_ref, m_scr, s_scr, p_scr):
    """Row tile x class chunk: online logsumexp across the class grid axis."""
    k = pl.program_id(1)

    @pl.when(k == 0)
    def _init():
        m_scr[...] = jnp.full(m_scr.shape, -jnp.inf, jnp.float32)
        s_scr[...] = jnp.zeros(s_scr.shape, jnp.float32)
        p_scr[...] = jnp.zeros(p_scr.shape, jnp.float32)

    x = logits_ref[...].astype(jnp.float32)                  # (tm, tc)
    lab = labels_ref[...]                                      # (tm, 1) int32
    tc = x.shape[-1]

    # accumulate the picked logit (label lives in exactly one chunk)
    cols = jax.lax.broadcasted_iota(jnp.int32, (1, tc), 1) + k * tc
    p_scr[...] = p_scr[...] + jnp.sum(
        jnp.where(cols == lab, x, 0.0), axis=-1, keepdims=True)

    # online logsumexp update
    m_old = m_scr[...]
    m_new = jnp.maximum(m_old, jnp.max(x, axis=-1, keepdims=True))
    s_scr[...] = s_scr[...] * jnp.exp(m_old - m_new) + jnp.sum(
        jnp.exp(x - m_new), axis=-1, keepdims=True)
    m_scr[...] = m_new

    @pl.when(k == pl.num_programs(1) - 1)
    def _finalize():
        per_row = m_scr[...] + jnp.log(s_scr[...]) - p_scr[...]
        masked = jnp.where(lab != IGNORE_INDEX, per_row, 0.0)
        rows8 = jax.lax.broadcasted_iota(jnp.int32, (8, 1), 0)
        out_ref[...] = jnp.where(rows8 == 0, jnp.sum(masked), 0.0)


def cross_entropy_loss_pallas(cls_score, label, *, loss_weight=1.0,
                              tm=None, class_chunk=None):
    """Equivalent of CrossEntropyLoss()(cls_score, label) with defaults."""
    N, C = cls_score.shape
    in_itemsize = jnp.dtype(cls_score.dtype).itemsize
    budget = _vmem_budget_bytes()
    per_elem = 2 * in_itemsize + 2 * 4
    min_tm = max(8, 32 // in_itemsize)            # sublane packing (f32:8, bf16:16)

    # Decide whether to split the class axis (vocab-scale C vs. VMEM budget).
    if class_chunk is None and min_tm * C * per_elem > budget:
        class_chunk = _pick_class_chunk(C, in_itemsize, budget)
    use_split = class_chunk is not None
    if use_split:
        class_chunk = max(128, (class_chunk // 128) * 128)
        if class_chunk >= C:
            use_split = False

    # Inputs stream in their native dtype (bf16 halves HBM traffic on v5e/v6e);
    # the in-kernel astype(f32) does the promotion.
    logits = cls_score
    labels2d = label.astype(jnp.int32).reshape(N, 1)

    if use_split:
        tc = class_chunk
        c_pad = _round_up(C, tc)
        if c_pad != C:
            # very-negative pad: exp underflows to 0, never matches a label
            logits = jnp.pad(logits, ((0, 0), (0, c_pad - C)),
                             constant_values=-1e30)
    else:
        tc = C
        c_pad = C

    if tm is None:
        tm = _pick_row_tile(N, tc, in_itemsize, budget, min_tm)
    else:
        tm = max(min_tm, (tm // min_tm) * min_tm)

    num_tiles = _cdiv(N, tm)
    n_pad = num_tiles * tm
    if n_pad != N:
        logits = jnp.pad(logits, ((0, n_pad - N), (0, 0)))
        labels2d = jnp.pad(labels2d, ((0, n_pad - N), (0, 0)),
                           constant_values=IGNORE_INDEX)

    cost = pl.CostEstimate(
        flops=5 * n_pad * c_pad,
        transcendentals=n_pad * c_pad,
        bytes_accessed=n_pad * c_pad * in_itemsize + n_pad * 4
        + num_tiles * 8 * 4,
    )
    out_shape = jax.ShapeDtypeStruct((num_tiles * 8, 1), jnp.float32)

    if use_split:
        num_chunks = c_pad // tc
        partial = pl.pallas_call(
            _ce_split_kernel,
            out_shape=out_shape,
            grid_spec=pltpu.PrefetchScalarGridSpec(
                num_scalar_prefetch=0,
                grid=(num_tiles, num_chunks),
                in_specs=[
                    pl.BlockSpec((tm, tc), lambda i, k: (i, k)),   # logits
                    pl.BlockSpec((tm, 1), lambda i, k: (i, 0)),    # labels
                ],
                out_specs=pl.BlockSpec((8, 1), lambda i, k: (i, 0)),
                scratch_shapes=[pltpu.VMEM((tm, 1), jnp.float32),  # m
                                pltpu.VMEM((tm, 1), jnp.float32),  # sumexp
                                pltpu.VMEM((tm, 1), jnp.float32)],  # picked
            ),
            compiler_params=pltpu.CompilerParams(
                dimension_semantics=("parallel", "arbitrary"),
                vmem_limit_bytes=budget,
            ),
            cost_estimate=cost,
        )(logits, labels2d)
    else:
        partial = pl.pallas_call(
            _ce_kernel,
            out_shape=out_shape,
            grid_spec=pltpu.PrefetchScalarGridSpec(
                num_scalar_prefetch=0,
                grid=(num_tiles,),
                in_specs=[
                    pl.BlockSpec((tm, C), lambda i: (i, 0)),   # logits tile
                    pl.BlockSpec((tm, 1), lambda i: (i, 0)),   # labels tile
                ],
                out_specs=pl.BlockSpec((8, 1), lambda i: (i, 0)),
            ),
            compiler_params=pltpu.CompilerParams(
                dimension_semantics=("parallel",),
                vmem_limit_bytes=budget,
            ),
            cost_estimate=cost,
        )(logits, labels2d)

    # mmdet semantics: reduction='none' CE then .mean() over ALL N rows
    # (ignored rows count as 0), then loss_weight. Tiny final reduce in JAX.
    return (loss_weight / N) * jnp.sum(partial[:, 0])


def _reference(cls_score, label, loss_weight=1.0):
    """Pure-JAX reference mirroring the PyTorch module exactly."""
    logp = jax.nn.log_softmax(cls_score.astype(jnp.float32), axis=-1)
    safe_lab = jnp.where(label == IGNORE_INDEX, 0, label)
    picked = jnp.take_along_axis(logp, safe_lab[:, None], axis=-1)[:, 0]
    loss = jnp.where(label == IGNORE_INDEX, 0.0, -picked)
    return loss_weight * jnp.mean(loss)


if __name__ == "__main__":
    key = jax.random.PRNGKey(0)
    k1, k2, k3, k4, k5, k6, k7 = jax.random.split(key, 7)

    # --- test 1: default path, f32, non-128-aligned C, some ignored rows ---
    N, C = 64, 48
    x = jax.random.normal(k1, (N, C), dtype=jnp.float32)
    lab = jax.random.randint(k2, (N,), 0, C, dtype=jnp.int32)
    lab = jnp.where(jax.random.bernoulli(k3, 0.1, (N,)), IGNORE_INDEX, lab)
    out = jax.block_until_ready(cross_entropy_loss_pallas(x, lab))
    ref = _reference(x, lab)
    assert jnp.allclose(out, ref, atol=1e-5, rtol=1e-5), (out, ref)

    # --- test 2: forced class-axis split (online logsumexp) path ---
    N2, C2 = 48, 320
    x2 = jax.random.normal(k4, (N2, C2), dtype=jnp.float32)
    lab2 = jax.random.randint(k5, (N2,), 0, C2, dtype=jnp.int32)
    lab2 = lab2.at[0].set(IGNORE_INDEX)
    out2 = jax.block_until_ready(
        cross_entropy_loss_pallas(x2, lab2, class_chunk=128))
    ref2 = _reference(x2, lab2)
    assert jnp.allclose(out2, ref2, atol=1e-5, rtol=1e-5), (out2, ref2)

    # --- test 3: bf16 logits streamed in native dtype ---
    N3, C3 = 128, 128
    x3 = jax.random.normal(k6, (N3, C3), dtype=jnp.float32).astype(jnp.bfloat16)
    lab3 = jax.random.randint(k7, (N3,), 0, C3, dtype=jnp.int32)
    out3 = jax.block_until_ready(cross_entropy_loss_pallas(x3, lab3))
    ref3 = _reference(x3, lab3)
    assert jnp.allclose(out3, ref3, atol=1e-4, rtol=1e-4), (out3, ref3)

    print("KERNEL_OK")
</pallas_src>

<mosaic_0001>
module attributes {stable_mosaic.version = 11 : i64} {
  func.func @_ce_kernel(%arg0: i32, %arg1: memref<8x48xf32, #tpu.memory_space<vmem>>, %arg2: memref<8x1xi32, #tpu.memory_space<vmem>>, %arg3: memref<8x1xf32, #tpu.memory_space<vmem>>) attributes {dimension_semantics = [#tpu.dimension_semantics<parallel>], iteration_bounds = array<i64: 8>, scalar_prefetch = 0 : i64, scratch_operands = 0 : i64, tpu.core_type = #tpu.core_type<tc>, window_params = [{transform_indices = @transform_0, window_bounds = array<i64: 8, 48>}, {transform_indices = @transform_1, window_bounds = array<i64: 8, 1>}, {transform_indices = @transform_2, window_bounds = array<i64: 8, 1>}]} {
    %c0 = arith.constant 0 : index
    %c0_0 = arith.constant 0 : index
    %0 = vector.load %arg1[%c0, %c0_0] : memref<8x48xf32, #tpu.memory_space<vmem>>, vector<8x48xf32>
    %c0_1 = arith.constant 0 : index
    %c0_2 = arith.constant 0 : index
    %1 = vector.load %arg2[%c0_1, %c0_2] : memref<8x1xi32, #tpu.memory_space<vmem>>, vector<8x1xi32>
    %cst = arith.constant dense<0xFF800000> : vector<8xf32>
    %2 = vector.multi_reduction <maximumf>, %0, %cst [1] : vector<8x48xf32> to vector<8xf32>
    %3 = vector.shape_cast %2 : vector<8xf32> to vector<8x1xf32>
    %4 = vector.broadcast %3 : vector<8x1xf32> to vector<8x48xf32>
    %5 = arith.subf %0, %4 : vector<8x48xf32>
    %6 = math.exp %5 : vector<8x48xf32>
    %cst_3 = arith.constant dense<0.000000e+00> : vector<8xf32>
    %7 = vector.multi_reduction <add>, %6, %cst_3 [1] : vector<8x48xf32> to vector<8xf32>
    %8 = vector.shape_cast %7 : vector<8xf32> to vector<8x1xf32>
    %9 = tpu.iota {dimensions = array<i32: 1>} : vector<1x48xi32>
    %10 = vector.broadcast %9 : vector<1x48xi32> to vector<8x48xi32>
    %11 = vector.broadcast %1 : vector<8x1xi32> to vector<8x48xi32>
    %12 = arith.cmpi eq, %10, %11 : vector<8x48xi32>
    %cst_4 = arith.constant 0.000000e+00 : f32
    %13 = vector.broadcast %cst_4 : f32 to vector<8x48xf32>
    %14 = arith.select %12, %0, %13 : vector<8x48xi1>, vector<8x48xf32>
    %cst_5 = arith.constant dense<0.000000e+00> : vector<8xf32>
    %15 = vector.multi_reduction <add>, %14, %cst_5 [1] : vector<8x48xf32> to vector<8xf32>
    %16 = vector.shape_cast %15 : vector<8xf32> to vector<8x1xf32>
    %17 = math.log %8 : vector<8x1xf32>
    %18 = arith.addf %3, %17 : vector<8x1xf32>
    %19 = arith.subf %18, %16 : vector<8x1xf32>
    %c-100_i32 = arith.constant -100 : i32
    %20 = vector.broadcast %c-100_i32 : i32 to vector<8x1xi32>
    %21 = arith.cmpi ne, %1, %20 : vector<8x1xi32>
    %cst_6 = arith.constant 0.000000e+00 : f32
    %22 = vector.broadcast %cst_6 : f32 to vector<8x1xf32>
    %23 = arith.select %21, %19, %22 : vector<8x1xi1>, vector<8x1xf32>
    %24 = tpu.iota {dimensions = array<i32: 0>} : vector<8x1xi32>
    %c0_i32 = arith.constant 0 : i32
    %25 = vector.broadcast %c0_i32 : i32 to vector<8x1xi32>
    %26 = arith.cmpi eq, %24, %25 : vector<8x1xi32>
    %27 = vector.shape_cast %23 : vector<8x1xf32> to vector<1x8x1xf32>
    %cst_7 = arith.constant dense<0.000000e+00> : vector<1xf32>
    %28 = vector.multi_reduction <add>, %27, %cst_7 [1, 2] : vector<1x8x1xf32> to vector<1xf32>
    %29 = vector.shape_cast %28 : vector<1xf32> to vector<1x1x1xf32>
    %30 = vector.extract %29[0, 0, 0] : f32 from vector<1x1x1xf32>
    %cst_8 = arith.constant 0.000000e+00 : f32
    %31 = vector.broadcast %30 : f32 to vector<8x1xf32>
    %32 = vector.broadcast %cst_8 : f32 to vector<8x1xf32>
    %33 = arith.select %26, %31, %32 : vector<8x1xi1>, vector<8x1xf32>
    %c0_9 = arith.constant 0 : index
    %c0_10 = arith.constant 0 : index
    %34 = vector.load %arg3[%c0_9, %c0_10] : memref<8x1xf32, #tpu.memory_space<vmem>>, vector<8x1xf32>
    tpu.vector_store %arg3[%c0_9, %c0_10], %33 {strides = array<i32>} : memref<8x1xf32, #tpu.memory_space<vmem>>, vector<8x1xf32>,
    return
  }
  func.func @transform_0(%arg0: i32) -> (i32, i32) {
    %c0_i32 = arith.constant 0 : i32
    %c0_i32_0 = arith.constant 0 : i32
    return %arg0, %c0_i32 : i32, i32
  }
  func.func @transform_1(%arg0: i32) -> (i32, i32) {
    %c0_i32 = arith.constant 0 : i32
    %c0_i32_0 = arith.constant 0 : i32
    return %arg0, %c0_i32 : i32, i32
  }
  func.func @transform_2(%arg0: i32) -> (i32, i32) {
    %c0_i32 = arith.constant 0 : i32
    %c0_i32_0 = arith.constant 0 : i32
    return %arg0, %c0_i32 : i32, i32
  }
}

</mosaic_0001>

<bundles_post_ra>
// kernel: tpu_custom_call.1
= control target key start
LH: loop header
LB: loop body
LE: loop exit
PB: predicated region body
PF: predicated region fallthrough
CT: control target
= control target key end

     0   :  { %s316_s9 = smov 0   ;;  %s346_s0 = inlined_call_operand.vmem [shape: f32[64,48], index: 0, kind: input, shape index: {}]   ;;  %s347_s1 = inlined_call_operand.vmem [shape: s32[64,1], index: 1, kind: input, shape index: {}]   ;;  %s348_s2 = inlined_call_operand.vmem [shape: f32[64,1], index: 2, kind: output, shape index: {}]  }
   0x1 LB: > { %s266_s10 = sadd.s32 4294967295, %s298_s9   ;;  %p270_p0 = scmp.ge.s32.totalorder %s298_s9, 1  ;;  %s298_s9 = sphi %s316_s9, %s12_s9  }
   0x2   : > { %p120_p1 = scmp.lt.s32.totalorder %s298_s9, 9 }
   0x4   : > { %p121_p2 = pnand %p270_p0, %p120_p1 }
   0x5   : > { %p144_p3 = scmp.lt.s32.totalorder (!%p121_p2), %s266_s10, 7  ;;  %v300_v0 = vmov (!%p121_p2), 0   ;;  %vm158_vm0 = vcmask (!%p121_p2), 392192   ;;  %v168_v7 = vlaneseq (!%p121_p2)  ;;  %vm187_vm3 = vcmask (!%p121_p2), 7168  }
   0x6   : > { %124 = sbr.rel (%p121_p2) target bundleno = 544 (0x220), region = 28  ;;  %287 = vset.pattern.permute.xlu0 (!%p121_p2), %v300_v0 }
   0x7   : > { %v169_v8 = vand.u32 (!%p121_p2), 127, %v168_v7  ;;  %v185_v29 = vshrl.u32 (!%p121_p2), %v168_v7, 7 }
   0x9   : > { %vm186_vm4 = vcmp.eq.s32.totalorder (!%p121_p2), %v185_v29, 0 }
   0xd   : > { %s350_s10 = smov (!%p144_p3, %s266_s10), 7 }
   0xe   : > { %s324_s11 = sshll.u32 %s350_s10, 3 }
   0xf   : > { %s147_s14 = scalar_lea.vmem %s346_s0, %s324_s11  ;;  %s151_s17 = scalar_lea.vmem %s347_s1, %s324_s11 }
  0x10   : > { %v156_v1 = vld [vmem:[%s147_s14] sm:$0xff]  ;;  %s155_s20 = scalar_lea.vmem %s348_s2, %s324_s11 }
  0x11   : > { %v159_v2 = vsel %vm158_vm0, %v156_v1, -inf  ;;  %v157_v3 = vld [vmem:[%s151_s17] sm:$0xff] }
  0x12   : > { %160 = vmax.xlane.f32.xlu0 %v159_v2  ;;  %vm182_vm2 = vcmp.ne.s32.totalorder %v157_v3, 4294967196 }
  0x28   : > { %171 = vperm.xlu0 %287, %v157_v3  }
  0x9f   : > { %v161_v4 = vpop.xlane.xlu0 %160 }
  0xa0   : > { %v162_v5 = vsub.f32 %v156_v1, %v161_v4 }
  0xa2   : > { %v163_v6 = vmul.f32 1.442695, %v162_v5 }
  0xa4   : > { %288 = vpow2.f32 %v163_v6 }
  0xa7   : > { %v172_v9 = vpop.permute.xlu0 %171 }
  0xa8   : > { %vm173_vm1 = vcmp.eq.s32.totalorder %v169_v8, %v172_v9 }
  0xa9   : > { %v174_v11 = vsel %vm173_vm1, %v156_v1, 0.0 }
  0xaa   : > { %v175_v13 = vsel %vm158_vm0, %v174_v11, 0.0 }
  0xae   : > { %v289_v10 = vpop.eup %288 }
  0xaf   : > { %v165_v12 = vsel %vm158_vm0, %v289_v10, 0.0 }
  0xb0   : > { %166 = vadd.xlane.f32.xlu1 %v165_v12 }
  0xb4   : > { %176 = vadd.xlane.f32.xlu1 %v175_v13 }
 0x13d   : > { %v167_v14 = vpop.xlane.xlu1 %166 }
 0x13e   : > { %290 = vlog2.f32 %v167_v14 }
 0x141   : > { %v177_v17 = vpop.xlane.xlu1 %176 }
 0x148   : > { %v291_v15 = vpop.eup %290 }
 0x149   : > { %v179_v16 = vmul.f32 0.6931472, %v291_v15 }
 0x14b   : > { %v180_v18 = vadd.f32 %v179_v16, %v161_v4 }
 0x14d   : > { %v181_v19 = vsub.f32 %v180_v18, %v177_v17 }
 0x14f   : > { %v183_v20 = vsel %vm182_vm2, %v181_v19, 0.0 }
 0x150   : > { %v188_v21 = vsel %vm187_vm3, %v183_v20, 0.0 }
 0x151   : > { %189 = vadd.xlane.f32.xlu1 %v188_v21 }
 0x1de   : > { %v190_v22 = vpop.xlane.xlu1 %189 }
 0x1df   : > { %v191_v23 = vrot.slane %v190_v22, 4 }
 0x1e1   : > { %v192_v24 = vadd.f32 %v191_v23, %v190_v22 }
 0x1e3   : > { %v193_v25 = vrot.slane %v192_v24, 2 }
 0x1e5   : > { %v194_v26 = vadd.f32 %v193_v25, %v192_v24 }
 0x1e7   : > { %v195_v27 = vrot.slane %v194_v26, 1 }
 0x1e9   : > { %v196_v28 = vadd.f32 %v195_v27, %v194_v26 }
 0x1eb   : > { %276 = vpush %v196_v28 }
 0x21c   : > { %s277_s21 = spop %276 }
 0x21d   : > { %v198_v30 = vstv %s277_s21 }
 0x21e   : > { %v199_v31 = vsel %vm186_vm4, %v198_v30, 0.0 }
 0x21f   : > { %200 = vst.msk [vmem:[%s155_s20] sm:$0xff] %vm187_vm3, %v199_v31 }
 0x220 PF: > { %s12_s9 = sadd.s32 1, %s298_s9  }
 0x221   : > { %p9_p4 = scmp.ge.s32.totalorder %s12_s9, 10  }
 0x223   :  { %11 = sbr.rel (!%p9_p4) target bundleno = 1 (0x1), region = 61 }

</bundles_post_ra>
